<compile_context>
chip_gen: v7x
topology: tpu7x:2x2x1
jax: 0.10.0
libtpu: 0.0.40
codegen_flags: <defaults>
</compile_context>

<pallas_src>
import functools

import jax
import jax.numpy as jnp
from jax import lax
from jax.experimental import pallas as pl
from jax.experimental.pallas import tpu as pltpu


_LANE = 128
_VMEM_BUDGET = 16 * 1024 * 1024   # target double-buffered working set
_VMEM_LIMIT = 32 * 1024 * 1024    # scoped VMEM limit handed to Mosaic
_MOSAIC = lambda sem: pltpu.CompilerParams(          # noqa: E731
    dimension_semantics=sem, vmem_limit_bytes=_VMEM_LIMIT)


# -----------------------------------------------------------------------------
# Tiling helper: lane-dense tiles over the flattened H*W dimension.
# -----------------------------------------------------------------------------
def _choose_tile_hw(hw, bytes_per_lane_col, budget=_VMEM_BUDGET):
    """Largest HW tile (multiple of 128) whose double-buffered footprint fits.

    `bytes_per_lane_col` = bytes of all tile-scaling blocks (inputs + outputs)
    per single lane column.  Footprint ~= 2 (double buffer) * that * tile.
    """
    if hw % _LANE != 0:
        # Last block dim must be a multiple of 128 or the full dim; fall back
        # to the (small / irregular) full spatial extent.
        return hw
    per_col = 2 * max(1, bytes_per_lane_col)
    max_tile = (budget // per_col) // _LANE * _LANE
    return int(min(hw, max(_LANE, max_tile)))


# -----------------------------------------------------------------------------
# ChannelPooling: mean over the channel axis (keepdim).  Sublane reduce; the
# trailing (OOB-padded) lanes only produce garbage in padded output lanes,
# which Pallas masks on store -> no explicit mask needed.
# -----------------------------------------------------------------------------
def _channel_pool_kernel(x_ref, o_ref, *, inv_c):
    x = x_ref[...].astype(jnp.float32)
    s = jnp.sum(x, axis=1, keepdims=True)
    o_ref[...] = (s * inv_c).astype(o_ref.dtype)


def channel_pooling(x):
    """mean(x, axis=1, keepdims=True) for NCHW input (lane-dense over H*W)."""
    N, C, H, W = x.shape
    HW = H * W
    xf = x.reshape(N, C, HW)
    tile = _choose_tile_hw(HW, (C + 1) * x.dtype.itemsize)
    grid = (N, pl.cdiv(HW, tile))
    out = pl.pallas_call(
        functools.partial(_channel_pool_kernel, inv_c=1.0 / C),
        out_shape=jax.ShapeDtypeStruct((N, 1, HW), x.dtype),
        grid=grid,
        in_specs=[pl.BlockSpec((1, C, tile), lambda n, t: (n, 0, t))],
        out_specs=pl.BlockSpec((1, 1, tile), lambda n, t: (n, 0, t)),
        compiler_params=_MOSAIC(("parallel", "parallel")),
    )(xf)
    return out.reshape(N, 1, H, W)


# -----------------------------------------------------------------------------
# GlobalPooling: mean over spatial dims (AdaptiveAvgPool2d(1)).
# Tiled HW reduction: grid = (N, C-blocks, HW-tiles), HW axis "arbitrary",
# f32 VMEM scratch accumulator, trailing tile masked (lane-axis reduction
# must not sum OOB padding).
# -----------------------------------------------------------------------------
def _global_pool_kernel(x_ref, o_ref, acc_ref, *, inv_hw, hw, tile, need_mask):
    t = pl.program_id(2)

    @pl.when(t == 0)
    def _():
        acc_ref[...] = jnp.zeros_like(acc_ref)

    x = x_ref[...].astype(jnp.float32)
    if need_mask:
        lane = lax.broadcasted_iota(jnp.int32, x.shape, 2)
        x = jnp.where(t * tile + lane < hw, x, 0.0)
    acc_ref[...] += jnp.sum(x, axis=-1, keepdims=True)

    @pl.when(t == pl.num_programs(2) - 1)
    def _():
        o_ref[...] = (acc_ref[...] * inv_hw).astype(o_ref.dtype)


def global_pooling(x, *, tile_hw=None):
    """mean over H and W for NCHW input -> (N, C, 1, 1)."""
    N, C, H, W = x.shape
    HW = H * W
    xf = x.reshape(N, C, HW)

    # Channel blocking: multiple of 8 when possible; split C when N is small
    # so megacore (v7x: 2 TCs) still has a shardable parallel axis.
    if C % 8 == 0 and C > 8:
        c_blk = min(C, 64)
        if N == 1 and C // c_blk < 2:
            c_blk = max(8, (C // 2) // 8 * 8)
    else:
        c_blk = C

    tile = tile_hw if tile_hw is not None else _choose_tile_hw(
        HW, c_blk * x.dtype.itemsize)
    need_mask = (HW % tile) != 0
    grid = (N, pl.cdiv(C, c_blk), pl.cdiv(HW, tile))

    out = pl.pallas_call(
        functools.partial(_global_pool_kernel, inv_hw=1.0 / HW, hw=HW,
                          tile=tile, need_mask=need_mask),
        out_shape=jax.ShapeDtypeStruct((N, C, 1), x.dtype),
        grid=grid,
        in_specs=[pl.BlockSpec((1, c_blk, tile), lambda n, c, t: (n, c, t))],
        out_specs=pl.BlockSpec((1, c_blk, 1), lambda n, c, t: (n, c, 0)),
        scratch_shapes=[pltpu.VMEM((1, c_blk, 1), jnp.float32)],
        compiler_params=_MOSAIC(("parallel", "parallel", "arbitrary")),
    )(xf)
    return out.reshape(N, C, 1, 1)


# -----------------------------------------------------------------------------
# Fused residual attention gate: out = x * (1 + attn).
# One small add on the attn block, a single multiply per element (done in the
# input dtype -> bf16-friendly on v6e/v7x, exact for f32).
# -----------------------------------------------------------------------------
def _apply_gate_kernel(x_ref, a_ref, o_ref):
    gate = (a_ref[...].astype(jnp.float32) + 1.0).astype(x_ref.dtype)
    o_ref[...] = x_ref[...] * gate


def apply_attention(x, attn):
    """out = x + x * attn, with attn shaped (N, C, 1, 1) or (N, 1, H, W)."""
    N, C, H, W = x.shape
    HW = H * W
    itemsize = x.dtype.itemsize

    if attn.shape == (N, C, 1, 1):
        # Channel attention: fold (N, C) into the sublane axis so small C
        # still fills 8-row vregs / dense DMA rows.
        rows = N * C
        xf = x.reshape(rows, HW)
        af = attn.reshape(rows, 1)
        row_blk = min(rows, 256) if rows % 8 == 0 else rows
        tile = _choose_tile_hw(HW, 2 * row_blk * itemsize)
        grid = (pl.cdiv(rows, row_blk), pl.cdiv(HW, tile))
        out = pl.pallas_call(
            _apply_gate_kernel,
            out_shape=jax.ShapeDtypeStruct((rows, HW), x.dtype),
            grid=grid,
            in_specs=[pl.BlockSpec((row_blk, tile), lambda r, t: (r, t)),
                      pl.BlockSpec((row_blk, 1), lambda r, t: (r, 0))],
            out_specs=pl.BlockSpec((row_blk, tile), lambda r, t: (r, t)),
            compiler_params=_MOSAIC(("parallel", "parallel")),
        )(xf, af)
        return out.reshape(N, C, H, W)

    elif attn.shape == (N, 1, H, W):
        # Spatial attention: attn broadcasts over C.
        xf = x.reshape(N, C, HW)
        af = attn.reshape(N, 1, HW)
        tile = _choose_tile_hw(HW, (2 * C + 1) * itemsize)
        grid = (N, pl.cdiv(HW, tile))
        out = pl.pallas_call(
            _apply_gate_kernel,
            out_shape=jax.ShapeDtypeStruct((N, C, HW), x.dtype),
            grid=grid,
            in_specs=[pl.BlockSpec((1, C, tile), lambda n, t: (n, 0, t)),
                      pl.BlockSpec((1, 1, tile), lambda n, t: (n, 0, t))],
            out_specs=pl.BlockSpec((1, C, tile), lambda n, t: (n, 0, t)),
            compiler_params=_MOSAIC(("parallel", "parallel")),
        )(xf, af)
        return out.reshape(N, C, H, W)

    raise ValueError(f"unsupported attention shape {attn.shape}")


# -----------------------------------------------------------------------------
# Non-Pallas helpers (convolutions / activations of the tiny attention MLPs).
# -----------------------------------------------------------------------------
def conv2d(x, w, b=None, *, padding=0, dilation=1):
    out = lax.conv_general_dilated(
        x, w,
        window_strides=(1, 1),
        padding=[(padding, padding), (padding, padding)],
        rhs_dilation=(dilation, dilation),
        dimension_numbers=("NCHW", "OIHW", "NCHW"),
    )
    if b is not None:
        out = out + b.reshape(1, -1, 1, 1)
    return out


def prelu(x, alpha):
    return jnp.where(x >= 0, x, alpha * x)


# -----------------------------------------------------------------------------
# DAMBlock forward (CAM + SAM 3x3 convolutions fused into one wider conv).
# -----------------------------------------------------------------------------
def dam_block(x, params, *, dilation_rate=2):
    pc, ps = params["cam"], params["sam"]
    c_cam = pc["conv_w"].shape[0]

    # Single read of x, one wide GEMM for the MXU, then split.
    w_cat = jnp.concatenate([pc["conv_w"], ps["conv_w"]], axis=0)
    b_cat = jnp.concatenate([pc["conv_b"], ps["conv_b"]], axis=0)
    y = conv2d(x, w_cat, b_cat, padding=1)
    y_cam, y_sam = y[:, :c_cam], y[:, c_cam:]

    # --- Channel attention branch -------------------------------------------
    a = global_pooling(y_cam)                               # Pallas
    a = conv2d(a, pc["fc1_w"], pc["fc1_b"])
    a = prelu(a, pc["prelu"])
    a = conv2d(a, pc["fc2_w"], None)
    a = jax.nn.sigmoid(a)
    cam_out = apply_attention(y_cam, a)                     # Pallas

    # --- Spatial attention branch --------------------------------------------
    a = channel_pooling(y_sam)                              # Pallas
    a = conv2d(a, ps["conv7a_w"], ps["conv7a_b"], padding=3)
    a = prelu(a, ps["prelu"])
    a = conv2d(a, ps["conv7b_w"], ps["conv7b_b"],
               padding=3 * dilation_rate, dilation=dilation_rate)
    a = jax.nn.sigmoid(a)
    sam_out = apply_attention(y_sam, a)                     # Pallas

    return cam_out, sam_out


# -----------------------------------------------------------------------------
# Pure-JAX reference (no Pallas, unfused convs) for correctness checking.
# -----------------------------------------------------------------------------
def dam_block_reference(x, params):
    pc = params["cam"]
    y = conv2d(x, pc["conv_w"], pc["conv_b"], padding=1)
    a = jnp.mean(y, axis=(2, 3), keepdims=True)
    a = conv2d(a, pc["fc1_w"], pc["fc1_b"])
    a = prelu(a, pc["prelu"])
    a = conv2d(a, pc["fc2_w"], None)
    a = jax.nn.sigmoid(a)
    cam = y + y * a

    ps = params["sam"]
    y = conv2d(x, ps["conv_w"], ps["conv_b"], padding=1)
    a = jnp.mean(y, axis=1, keepdims=True)
    a = conv2d(a, ps["conv7a_w"], ps["conv7a_b"], padding=3)
    a = prelu(a, ps["prelu"])
    a = conv2d(a, ps["conv7b_w"], ps["conv7b_b"], padding=6, dilation=2)
    a = jax.nn.sigmoid(a)
    sam = y + y * a
    return cam, sam


def init_params(key, in_channels):
    c_cam = in_channels // 2
    c_sam = in_channels - c_cam
    ks = jax.random.split(key, 11)
    n = lambda k, s: 0.1 * jax.random.normal(k, s, dtype=jnp.float32)
    return {
        "cam": {
            "conv_w": n(ks[0], (c_cam, in_channels, 3, 3)),
            "conv_b": n(ks[1], (c_cam,)),
            "fc1_w": n(ks[2], (c_cam, c_cam, 1, 1)),
            "fc1_b": n(ks[3], (c_cam,)),
            "prelu": jnp.asarray(0.25, jnp.float32),
            "fc2_w": n(ks[4], (c_cam, c_cam, 1, 1)),
        },
        "sam": {
            "conv_w": n(ks[5], (c_sam, in_channels, 3, 3)),
            "conv_b": n(ks[6], (c_sam,)),
            "conv7a_w": n(ks[7], (1, 1, 7, 7)),
            "conv7a_b": n(ks[8], (1,)),
            "prelu": jnp.asarray(0.25, jnp.float32),
            "conv7b_w": n(ks[9], (1, 1, 7, 7)),
            "conv7b_b": n(ks[10], (1,)),
        },
    }


if __name__ == "__main__":
    key = jax.random.PRNGKey(0)
    k_x, k_p, k_y1, k_y2, k_y3, k_a1, k_a2 = jax.random.split(key, 7)

    # ---------- direct Pallas-kernel checks ----------------------------------
    # channel_pooling (sublane reduce)
    y1 = jax.random.normal(k_y1, (2, 6, 16, 16), jnp.float32)
    cp = jax.block_until_ready(channel_pooling(y1))
    assert jnp.allclose(cp, jnp.mean(y1, axis=1, keepdims=True),
                        atol=1e-5, rtol=1e-4)

    # global_pooling: small tile override forces multiple HW tiles, a masked
    # trailing tile, and the C-split parallel axis (N == 1, C multiple of 8).
    y2 = jax.random.normal(k_y2, (1, 16, 20, 32), jnp.float32)
    gp = jax.block_until_ready(global_pooling(y2, tile_hw=256))
    assert jnp.allclose(gp, jnp.mean(y2, axis=(2, 3), keepdims=True),
                        atol=1e-5, rtol=1e-4)

    # apply_attention: channel-broadcast (sublane-packed) and spatial-broadcast
    y3 = jax.random.normal(k_y3, (2, 8, 16, 16), jnp.float32)
    a_c = jax.nn.sigmoid(jax.random.normal(k_a1, (2, 8, 1, 1), jnp.float32))
    a_s = jax.nn.sigmoid(jax.random.normal(k_a2, (2, 1, 16, 16), jnp.float32))
    out_c = jax.block_until_ready(apply_attention(y3, a_c))
    out_s = jax.block_until_ready(apply_attention(y3, a_s))
    assert jnp.allclose(out_c, y3 + y3 * a_c, atol=1e-5, rtol=1e-4)
    assert jnp.allclose(out_s, y3 + y3 * a_s, atol=1e-5, rtol=1e-4)

    # ---------- full DAMBlock forward vs. pure-JAX reference ------------------
    N, C, H, W = 2, 4, 16, 16
    x = jax.random.normal(k_x, (N, C, H, W), dtype=jnp.float32)
    params = init_params(k_p, C)

    cam_out, sam_out = jax.jit(dam_block)(x, params)
    cam_out = jax.block_until_ready(cam_out)
    sam_out = jax.block_until_ready(sam_out)
    cam_ref, sam_ref = dam_block_reference(x, params)

    assert cam_out.shape == (N, C // 2, H, W)
    assert sam_out.shape == (N, C - C // 2, H, W)
    assert jnp.allclose(cam_out, cam_ref, atol=1e-5, rtol=1e-4)
    assert jnp.allclose(sam_out, sam_ref, atol=1e-5, rtol=1e-4)

    print("KERNEL_OK")
</pallas_src>

<mosaic_0001>
module attributes {stable_mosaic.version = 11 : i64} {
  func.func @_channel_pool_kernel(%arg0: i32, %arg1: i32, %arg2: memref<1x6x256xf32, #tpu.memory_space<vmem>>, %arg3: memref<1x1x256xf32, #tpu.memory_space<vmem>>) attributes {dimension_semantics = [#tpu.dimension_semantics<parallel>, #tpu.dimension_semantics<parallel>], iteration_bounds = array<i64: 2, 1>, scalar_prefetch = 0 : i64, scratch_operands = 0 : i64, tpu.core_type = #tpu.core_type<tc>, window_params = [{transform_indices = @transform_0, window_bounds = array<i64: 1, 6, 256>}, {transform_indices = @transform_1, window_bounds = array<i64: 1, 1, 256>}]} {
    %c0 = arith.constant 0 : index
    %c0_0 = arith.constant 0 : index
    %c0_1 = arith.constant 0 : index
    %0 = vector.load %arg2[%c0, %c0_0, %c0_1] : memref<1x6x256xf32, #tpu.memory_space<vmem>>, vector<1x6x256xf32>
    %cst = arith.constant dense<0.000000e+00> : vector<1x256xf32>
    %1 = vector.multi_reduction <add>, %0, %cst [1] : vector<1x6x256xf32> to vector<1x256xf32>
    %2 = vector.shape_cast %1 : vector<1x256xf32> to vector<1x1x256xf32>
    %cst_2 = arith.constant 0.166666672 : f32
    %3 = vector.broadcast %cst_2 : f32 to vector<1x1x256xf32>
    %4 = arith.mulf %2, %3 : vector<1x1x256xf32>
    %c0_3 = arith.constant 0 : index
    %c0_4 = arith.constant 0 : index
    %c0_5 = arith.constant 0 : index
    %5 = vector.load %arg3[%c0_3, %c0_4, %c0_5] : memref<1x1x256xf32, #tpu.memory_space<vmem>>, vector<1x1x256xf32>
    tpu.vector_store %arg3[%c0_3, %c0_4, %c0_5], %4 {strides = array<i32>} : memref<1x1x256xf32, #tpu.memory_space<vmem>>, vector<1x1x256xf32>,
    return
  }
  func.func @transform_0(%arg0: i32, %arg1: i32) -> (i32, i32, i32) {
    %c0_i32 = arith.constant 0 : i32
    %c0_i32_0 = arith.constant 0 : i32
    return %arg0, %c0_i32, %arg1 : i32, i32, i32
  }
  func.func @transform_1(%arg0: i32, %arg1: i32) -> (i32, i32, i32) {
    %c0_i32 = arith.constant 0 : i32
    %c0_i32_0 = arith.constant 0 : i32
    return %arg0, %c0_i32, %arg1 : i32, i32, i32
  }
}

</mosaic_0001>

<bundles_post_ra>
// kernel: tpu_custom_call.1
= control target key start
LH: loop header
LB: loop body
LE: loop exit
PB: predicated region body
PF: predicated region fallthrough
CT: control target
= control target key end

     0   :  { %6 = vsyncpa [#allocation3], 0  ;;  %s556_s0 = inlined_call_operand.vmem [shape: f32[2,6,256], index: 0, kind: input, shape index: {}]   ;;  %s557_s1 = inlined_call_operand.hbm [shape: f32[2,1,256], index: 1, kind: output, shape index: {}]  }
   0x1   :  { %8 = vsyncpa [#allocation3 + $0x1], 0  ;;  %s444_s6 = smov 0   ;;  %s446_s7 = smov 0  }
   0x2   :  { %s448_s8 = smov 0   ;;  %s450_s9 = smov 0  }
   0x3   :  { %s452_s10 = smov 0   ;;  %s454_s11 = smov 0  }
   0x4 LB: > { %s281_s12 = sadd.s32 4294967295, %s430_s11   ;;  %s282_s13 = sadd.s32 4294967294, %s430_s11   ;;  %s430_s11 = sphi %s454_s11, %s14_s11   ;;  %s426_s10 = sphi %s452_s10, %s564_s10   ;;  %s422_s9 = sphi %s450_s9, %s563_s9   ;;  %s418_s8 = sphi %s448_s8, %s562_s8   ;;  %s414_s7 = sphi %s446_s7, %s561_s7   ;;  %s410_s6 = sphi %s444_s6, %s560_s6  }
   0x5   : > { %s26_s14 = sadd.s32 1, %s426_s10  ;;  %s63_s15 = sadd.s32 1, %s418_s8 }
   0x6   : > { %p28_p0 = scmp.ge.s32.totalorder %s26_s14, 2  ;;  %p73_p1 = scmp.ne.s32.totalorder %s418_s8, %s414_s7 }
   0x7   : > { %p74_p2 = scmp.eq.s32.totalorder %s281_s12, 1  ;;  %p79_p3 = scmp.ne.s32.totalorder %s414_s7, %s410_s6 }
   0x8   : > { %s566_s14 = smov (%p28_p0, %s26_s14), 0  ;;  %p80_p5 = scmp.eq.s32.totalorder %s282_s13, 1 }
   0x9   : > { %p484_p4 = por %p74_p2, %p73_p1  ;;  %s58_s17 = ssub.s32 %s426_s10, %s566_s14 }
   0xa   : > { %p285_p6 = scmp.ge.s32.totalorder %s430_s11, 1  ;;  %p61_p7 = scmp.eq.s32.totalorder %s58_s17, 0 }
   0xb   : > { %p491_p8 = por %p80_p5, %p79_p3  ;;  %p111_p9 = scmp.lt.s32.totalorder %s430_s11, 3 }
   0xc   : > { %s497_s19 = scalar_select %p61_p7, %s418_s8, %s63_s15  }
   0xd   : > { %p112_p10 = pnand %p285_p6, %p111_p9 }
   0xe   : > { %p136_p11 = scmp.lt.s32.totalorder (!%p112_p10), %s422_s9, 1  ;;  %vm148_vm0 = vcmask (!%p112_p10), 1045504   ;;  %v432_v10 = vmov (!%p112_p10), 1966171168   ;;  %v171_v12 = vlaneseq (!%p112_p10)  ;;  %s132_s25 = sand.u32 (!%p112_p10), 1, %s414_s7  }
   0xf   : > { %115 = sbr.rel (%p112_p10) target bundleno = 62 (0x3e), region = 24  ;;  %v169_v11 = vunpack.c.l.s4 (!%p112_p10), %v432_v10  ;;  %s286_s26 = sshll.u32 (!%p112_p10), %s132_s25, 1 }
  0x10   : > { %v172_v18 = vshrl.u32 (!%p112_p10), %v171_v12, 7  ;;  %s134_s27 = scalar_lea.vmem (!%p112_p10), [#allocation2], %s286_s26  ;;  %s295_s29 = sshll.u32 (!%p112_p10), %s422_s9, 5  ;;  %vm185_vm1 = vcmp.lt.s32.totalorder (!%p112_p10), %v171_v12, 256 }
  0x11   : > { %v170_v17 = vunpack.c.0.s8 (!%p112_p10), %v169_v11  ;;  %s205_s28 = sshll.u32 (!%p112_p10), %s134_s27, 4  ;;  %s511_s3 = scalar_lea.hbm (!%p112_p10), %s557_s1, %s295_s29  ;;  %s506_s28 = int_to_ptr.vmem [resolvable:$true] %s205_s28 }
  0x12   : > { %s189_s4 = scalar_lea.sflag (!%p112_p10), [#allocation3], %s132_s25  ;;  %s352_s5 = scalar_lea.vmem (!%p112_p10), %s506_s28, 32 }
  0x13   : > { %v173_v23 = vsub.s32 (!%p112_p10), %v170_v17, %v172_v18  ;;  %p353_p12 = scmp.ne.s32.totalorder (!%p112_p10), %s506_s28, %s352_s5 }
  0x15   : > { %p354_p13 = pnand (!%p112_p10), %p353_p12, %p484_p4 }
  0x16   : > { %s137_s20 = scalar_select %p136_p11, %s422_s9, 1 }
  0x17   : > { %p355_p0 = pneg %p354_p13  ;;  %s433_s9 = smov [#allocation2]  }
  0x18   : > { %s294_s21 = sshll.u32 %s137_s20, 4  ;;  %s356_s12 = sshll.u32 %s433_s9, 4  ;;  %s357_s12 = int_to_ptr.vmem [resolvable:$false] %s356_s12 }
  0x19   : > { %s143_s24 = scalar_lea.vmem %s556_s0, %s294_s21  ;;  %s358_s13 = scalar_lea.vmem %s357_s12, 64 }
  0x1a   : > { %v146_v0 = vld [vmem:[%s143_s24] sm:$0x3f]  ;;  %v147_v1 = vld [vmem:[%s143_s24 + $0x8] sm:$0x3f]  ;;  %p359_p1 = scmp.lt.s32.totalorder %s506_s28, %s357_s12  ;;  %p360_p2 = scmp.lt.s32.totalorder %s358_s13, %s352_s5 }
  0x1b   : > { %v149_v2 = vsel %vm148_vm0, %v146_v0, 0.0  ;;  %v156_v3 = vsel %vm148_vm0, %v147_v1, 0.0 }
  0x1c   : > { %v150_v4 = vrot.slane %v149_v2, 4  ;;  %v157_v5 = vrot.slane %v156_v3, 4  ;;  %p361_p3 = por %p360_p2, %p359_p1 }
  0x1e   : > { %v151_v6 = vadd.f32 %v150_v4, %v149_v2  ;;  %v158_v7 = vadd.f32 %v157_v5, %v156_v3  ;;  %p362_p5 = pnand %p361_p3, %p355_p0 }
  0x20   : > { %v152_v8 = vrot.slane %v151_v6, 2  ;;  %v159_v9 = vrot.slane %v158_v7, 2 }
  0x22   : > { %v153_v13 = vadd.f32 %v152_v8, %v151_v6  ;;  %v160_v14 = vadd.f32 %v159_v9, %v158_v7 }
  0x24   : > { %v154_v15 = vrot.slane %v153_v13, 1  ;;  %v161_v16 = vrot.slane %v160_v14, 1 }
  0x26   : > { %v155_v19 = vadd.f32 %v154_v15, %v153_v13  ;;  %v162_v20 = vadd.f32 %v161_v16, %v160_v14 }
  0x28   : > { %v163_v21 = vmul.f32 0.16666667, %v155_v19  ;;  %v164_v22 = vmul.f32 0.16666667, %v162_v20 }
  0x2a   : > { %v167_v24 = vcombine.low %v163_v21, %v164_v22 }
  0x2c   : > { %v174_v25 = vrot.slane %v167_v24, %v173_v23 }
  0x2e   : > { %v181_v26 = vrot.slane %v174_v25, %v173_v23 }
  0x30   : > { %187 = vst.msk [vmem:[%s134_s27] sm:$0x3] %vm185_vm1, %v181_v26 }
  0x31   : > { %365 = shalt.err (!%p362_p5)
}
  0x32   : > { %s366_s15 = scalar_lea.hbm %s511_s3, 32  ;;  %s370_s21 = scalar_lea.hbm %s557_s1, 64 }
  0x33   : > { %p367_p6 = scmp.ne.s32.totalorder %s511_s3, %s366_s15  ;;  %p371_p10 = scmp.lt.u32.totalorder %s511_s3, %s557_s1 }
  0x34   : > { %p372_p11 = scmp.lt.u32.totalorder %s370_s21, %s366_s15  ;;  %p374_p13 = scmp.lt.u32.totalorder %s366_s15, %s511_s3 }
  0x35   : > { %p368_p7 = pnand %p367_p6, %p484_p4 }
  0x36   : > { %p373_p12 = por %p372_p11, %p371_p10 }
  0x37   : > { %p369_p9 = pneg %p368_p7 }
  0x38   : > { %p375_p0 = por %p374_p13, %p373_p12 }
  0x3a   : > { %p376_p1 = pnand %p375_p0, %p369_p9 }
  0x3c   : > { %379 = shalt.err (!%p376_p1)
}
  0x3d   : > { %296 = dma.vmem_to_hbm [thread:$0]  (%p484_p4), %s506_s28, 32, %s511_s3, %s189_s4  }
  0x3e PF: > { %p302_p2 = scmp.ge.s32.totalorder %s430_s11, 2  ;;  %s217_s24 = sand.u32 1, %s410_s6  }
  0x3f   : > { %s218_s25 = scalar_lea.sflag [#allocation3], %s217_s24 }
  0x40   : > { %p299_p3 = pnand %p302_p2, %p491_p8 }
  0x42   : > { %405 = dma.done.wait (!%p299_p3), %s218_s25, 32  }
  0x43   : > { %407 = vsyncadd (!%p299_p3), %s218_s25, 4294967264  ;;  %s14_s11 = sadd.s32 1, %s430_s11   ;;  %s560_s6 = smov %s414_s7 }
  0x44   : > { %p11_p5 = scmp.ge.s32.totalorder %s14_s11, 4   ;;  %s561_s7 = smov %s418_s8 }
  0x45   : > { %s562_s8 = smov %s497_s19  ;;  %s563_s9 = smov %s426_s10 }
  0x46   : > { %s564_s10 = smov %s566_s14  ;;  %13 = sbr.rel (!%p11_p5) target bundleno = 4 (0x4), region = 59 }
  0x4d   :  { %223 = vsyncpa [#allocation3], 1 }
  0x4e   :  { %225 = vsyncpa [#allocation3 + $0x1], 1 }

</bundles_post_ra>
